<compile_context>
chip_gen: v7x
topology: tpu7x:2x2x1
jax: 0.10.0
libtpu: 0.0.40
codegen_flags: <defaults>
</compile_context>

<pallas_src>
import jax
import jax.numpy as jnp
from jax.experimental import pallas as pl
from jax.experimental.pallas import tpu as pltpu


def _round_up(x: int, m: int) -> int:
    return (x + m - 1) // m * m


def mlp_kernel(x_ref, w1_ref, b1_ref, w2_ref, b2_ref, o_ref):
    # fc1: (tm, In) @ (In, H_p) on the MXU, f32 accumulation.
    h = jnp.dot(x_ref[...], w1_ref[...], preferred_element_type=jnp.float32)
    h = jnp.maximum(h + b1_ref[...], 0.0)          # bias + ReLU on the VPU
    # fc2: (tm, H_p) @ (H_p, Out) on the MXU, f32 accumulation.
    o = jnp.dot(h.astype(w2_ref.dtype), w2_ref[...],
                preferred_element_type=jnp.float32)
    o_ref[...] = (o + b2_ref[...]).astype(o_ref.dtype)


def pad_params(w1, b1, w2, b2):
    """One-time (init-time) padding of the hidden dim to a 128-lane multiple.

    Padded b1 columns are 0, ReLU(0)=0, and the matching padded W2 rows are
    0, so the padded hidden columns contribute nothing to the output.
    """
    In, H = w1.shape
    Out = w2.shape[1]
    H_p = _round_up(H, 128)
    w1_p = jnp.zeros((In, H_p), w1.dtype).at[:, :H].set(w1)
    b1_p = jnp.zeros((1, H_p), b1.dtype).at[:, :H].set(b1.reshape(1, H))
    w2_p = jnp.zeros((H_p, Out), w2.dtype).at[:H, :].set(w2)
    b2_p = b2.reshape(1, Out)
    return w1_p, b1_p, w2_p, b2_p


def simple_model_forward(x, w1_p, b1_p, w2_p, b2_p, *, tm_max: int = 1024):
    """x: (B, In); w1_p: (In, H_p); b1_p: (1, H_p); w2_p: (H_p, Out); b2_p: (1, Out)."""
    B, In = x.shape
    H_p = w1_p.shape[1]
    Out = w2_p.shape[1]
    dt = x.dtype

    # Batch tile: multiple of 8 sublanes (or exactly the full batch dim).
    tm_max = _round_up(max(int(tm_max), 8), 8)
    if B > tm_max:
        tm = tm_max                                  # stream big batches
    elif B >= 256:
        tm = _round_up(pl.cdiv(B, 2), 8)             # >=2 grid steps (v7x 2-TC)
    else:
        tm = B                                       # single tile, no padding
    grid = (pl.cdiv(B, tm),)                         # partial last tile OK

    # Advisory cost for XLA scheduling around the custom call.
    flops = 2 * B * In * H_p + 2 * B * H_p * Out
    bytes_accessed = 4 * (B * In + In * H_p + H_p + H_p * Out + Out + B * Out)

    # VMEM budget: resident weights/biases + double-buffered x/out tiles +
    # live f32 intermediate h; leave headroom below the chip's capacity.
    vmem_bytes = 4 * (In * H_p + H_p * Out + H_p + Out
                      + 2 * tm * In + 2 * tm * Out + tm * H_p)
    try:
        vmem_cap = int(pltpu.get_tpu_info().vmem_capacity_bytes)
    except Exception:
        vmem_cap = 64 << 20                          # conservative (v7x per-TC)
    vmem_limit = int(min(max(2 * vmem_bytes, 16 << 20), vmem_cap - (16 << 20)))

    return pl.pallas_call(
        mlp_kernel,
        out_shape=jax.ShapeDtypeStruct((B, Out), dt),
        grid=grid,
        in_specs=[
            pl.BlockSpec((tm, In), lambda i: (i, 0)),     # streamed x tile
            pl.BlockSpec((In, H_p), lambda i: (0, 0)),    # resident W1
            pl.BlockSpec((1, H_p), lambda i: (0, 0)),     # resident b1
            pl.BlockSpec((H_p, Out), lambda i: (0, 0)),   # resident W2
            pl.BlockSpec((1, Out), lambda i: (0, 0)),     # resident b2
        ],
        out_specs=pl.BlockSpec((tm, Out), lambda i: (i, 0)),
        compiler_params=pltpu.CompilerParams(
            dimension_semantics=("parallel",),            # 2-TC sharding on v7x
            vmem_limit_bytes=vmem_limit,
        ),
        cost_estimate=pl.CostEstimate(
            flops=flops, transcendentals=0, bytes_accessed=bytes_accessed),
    )(x, w1_p, b1_p, w2_p, b2_p)


def reference_forward(x, w1, b1, w2, b2):
    h = jnp.maximum(x @ w1 + b1.reshape(1, -1), 0.0)
    return h @ w2 + b2.reshape(1, -1)


if __name__ == "__main__":
    input_dim, hidden_dim, output_dim = 10, 20, 2
    batch = 8

    key = jax.random.PRNGKey(0)
    kx, kw1, kb1, kw2, kb2 = jax.random.split(key, 5)

    x = jax.random.normal(kx, (batch, input_dim), dtype=jnp.float32)
    # Deterministic param init (uniform, roughly PyTorch's default scale).
    s1 = 1.0 / input_dim ** 0.5
    s2 = 1.0 / hidden_dim ** 0.5
    w1 = jax.random.uniform(kw1, (input_dim, hidden_dim), jnp.float32, -s1, s1)
    b1 = jax.random.uniform(kb1, (hidden_dim,), jnp.float32, -s1, s1)
    w2 = jax.random.uniform(kw2, (hidden_dim, output_dim), jnp.float32, -s2, s2)
    b2 = jax.random.uniform(kb2, (output_dim,), jnp.float32, -s2, s2)

    # One-time weight padding at "model init" — outside the jitted forward.
    w1_p, b1_p, w2_p, b2_p = pad_params(w1, b1, w2, b2)

    fwd = jax.jit(simple_model_forward)
    out = jax.block_until_ready(fwd(x, w1_p, b1_p, w2_p, b2_p))

    ref = reference_forward(x, w1, b1, w2, b2)
    assert out.shape == (batch, output_dim)
    # Tolerance covers default-precision (bf16-pass) MXU matmuls on either side.
    err = jnp.max(jnp.abs(out - ref))
    assert jnp.allclose(out, ref, atol=2e-2, rtol=2e-2), f"max abs err {err}"

    print("KERNEL_OK")
</pallas_src>

<mosaic_0001>
module attributes {stable_mosaic.version = 11 : i64} {
  func.func @mlp_kernel(%arg0: i32, %arg1: memref<8x10xf32, #tpu.memory_space<vmem>>, %arg2: memref<10x128xf32, #tpu.memory_space<vmem>>, %arg3: memref<1x128xf32, #tpu.memory_space<vmem>>, %arg4: memref<128x2xf32, #tpu.memory_space<vmem>>, %arg5: memref<1x2xf32, #tpu.memory_space<vmem>>, %arg6: memref<8x2xf32, #tpu.memory_space<vmem>>) attributes {dimension_semantics = [#tpu.dimension_semantics<parallel>], iteration_bounds = array<i64: 1>, scalar_prefetch = 0 : i64, scratch_operands = 0 : i64, tpu.core_type = #tpu.core_type<tc>, window_params = [{transform_indices = @transform_0, window_bounds = array<i64: 8, 10>}, {pipeline_mode = #tpu.pipeline_mode<synchronous>, transform_indices = @transform_1, window_bounds = array<i64: 10, 128>}, {pipeline_mode = #tpu.pipeline_mode<synchronous>, transform_indices = @transform_2, window_bounds = array<i64: 1, 128>}, {pipeline_mode = #tpu.pipeline_mode<synchronous>, transform_indices = @transform_3, window_bounds = array<i64: 128, 2>}, {pipeline_mode = #tpu.pipeline_mode<synchronous>, transform_indices = @transform_4, window_bounds = array<i64: 1, 2>}, {transform_indices = @transform_5, window_bounds = array<i64: 8, 2>}]} {
    %c0 = arith.constant 0 : index
    %c0_0 = arith.constant 0 : index
    %0 = vector.load %arg1[%c0, %c0_0] : memref<8x10xf32, #tpu.memory_space<vmem>>, vector<8x10xf32>
    %c0_1 = arith.constant 0 : index
    %c0_2 = arith.constant 0 : index
    %1 = vector.load %arg2[%c0_1, %c0_2] : memref<10x128xf32, #tpu.memory_space<vmem>>, vector<10x128xf32>
    %cst = arith.constant dense<0.000000e+00> : vector<8x128xf32>
    %2 = tpu.matmul %0, %1, %cst {dimension_numbers = #tpu.dot_dimension_numbers<[1], [0], [0], [1], [0, 0, 1, 1], [], []>} : vector<8x10xf32>, vector<10x128xf32>, vector<8x128xf32> -> vector<8x128xf32>
    %c0_3 = arith.constant 0 : index
    %c0_4 = arith.constant 0 : index
    %3 = vector.load %arg3[%c0_3, %c0_4] : memref<1x128xf32, #tpu.memory_space<vmem>>, vector<1x128xf32>
    %4 = vector.broadcast %3 : vector<1x128xf32> to vector<8x128xf32>
    %5 = arith.addf %2, %4 : vector<8x128xf32>
    %cst_5 = arith.constant 0.000000e+00 : f32
    %6 = vector.broadcast %cst_5 : f32 to vector<8x128xf32>
    %7 = arith.maximumf %5, %6 : vector<8x128xf32>
    %c0_6 = arith.constant 0 : index
    %c0_7 = arith.constant 0 : index
    %8 = vector.load %arg4[%c0_6, %c0_7] : memref<128x2xf32, #tpu.memory_space<vmem>>, vector<128x2xf32>
    %cst_8 = arith.constant dense<0.000000e+00> : vector<8x2xf32>
    %9 = tpu.matmul %7, %8, %cst_8 {dimension_numbers = #tpu.dot_dimension_numbers<[1], [0], [0], [1], [0, 0, 1, 1], [], []>} : vector<8x128xf32>, vector<128x2xf32>, vector<8x2xf32> -> vector<8x2xf32>
    %c0_9 = arith.constant 0 : index
    %c0_10 = arith.constant 0 : index
    %10 = vector.load %arg5[%c0_9, %c0_10] : memref<1x2xf32, #tpu.memory_space<vmem>>, vector<1x2xf32>
    %11 = vector.broadcast %10 : vector<1x2xf32> to vector<8x2xf32>
    %12 = arith.addf %9, %11 : vector<8x2xf32>
    %c0_11 = arith.constant 0 : index
    %c0_12 = arith.constant 0 : index
    %13 = vector.load %arg6[%c0_11, %c0_12] : memref<8x2xf32, #tpu.memory_space<vmem>>, vector<8x2xf32>
    tpu.vector_store %arg6[%c0_11, %c0_12], %12 {strides = array<i32>} : memref<8x2xf32, #tpu.memory_space<vmem>>, vector<8x2xf32>,
    return
  }
  func.func @transform_0(%arg0: i32) -> (i32, i32) {
    %c0_i32 = arith.constant 0 : i32
    %c0_i32_0 = arith.constant 0 : i32
    return %arg0, %c0_i32 : i32, i32
  }
  func.func @transform_1(%arg0: i32) -> (i32, i32) {
    %c0_i32 = arith.constant 0 : i32
    %c0_i32_0 = arith.constant 0 : i32
    %c0_i32_1 = arith.constant 0 : i32
    return %c0_i32, %c0_i32_0 : i32, i32
  }
  func.func @transform_2(%arg0: i32) -> (i32, i32) {
    %c0_i32 = arith.constant 0 : i32
    %c0_i32_0 = arith.constant 0 : i32
    %c0_i32_1 = arith.constant 0 : i32
    return %c0_i32, %c0_i32_0 : i32, i32
  }
  func.func @transform_3(%arg0: i32) -> (i32, i32) {
    %c0_i32 = arith.constant 0 : i32
    %c0_i32_0 = arith.constant 0 : i32
    %c0_i32_1 = arith.constant 0 : i32
    return %c0_i32, %c0_i32_0 : i32, i32
  }
  func.func @transform_4(%arg0: i32) -> (i32, i32) {
    %c0_i32 = arith.constant 0 : i32
    %c0_i32_0 = arith.constant 0 : i32
    %c0_i32_1 = arith.constant 0 : i32
    return %c0_i32, %c0_i32_0 : i32, i32
  }
  func.func @transform_5(%arg0: i32) -> (i32, i32) {
    %c0_i32 = arith.constant 0 : i32
    %c0_i32_0 = arith.constant 0 : i32
    return %arg0, %c0_i32 : i32, i32
  }
}

</mosaic_0001>

<bundles_post_ra>
// kernel: simple_model_forward.1
= control target key start
LH: loop header
LB: loop body
LE: loop exit
PB: predicated region body
PF: predicated region fallthrough
CT: control target
= control target key end

     0   :  { %vm34_vm0 = vcmask 1041408   ;;  %v306_v0 = vmov 0.0|0.0   ;;  %vm307_vm1 = vmmov 1   ;;  %vm308_vm3 = vmmov 0   ;;  %s406_s1 = inlined_call_operand.vmem [shape: f32[10,128], index: 1, kind: input, shape index: {}]   ;;  %s407_s3 = inlined_call_operand.vmem [shape: f32[128,2], index: 3, kind: input, shape index: {}]   ;;  %s408_s0 = inlined_call_operand.vmem [shape: f32[8,10], index: 0, kind: input, shape index: {}]   ;;  %s409_s2 = inlined_call_operand.vmem [shape: f32[1,128], index: 2, kind: input, shape index: {}]   ;;  %s410_s4 = inlined_call_operand.vmem [shape: f32[1,2], index: 4, kind: input, shape index: {}]   ;;  %s411_s5 = inlined_call_operand.vmem [shape: f32[8,2], index: 5, kind: output, shape index: {}]  }
   0x1   :  { %274 = vmatprep.subr.bf16.mxu0 %v306_v0  ;;  %v21_v1 = vld [vmem:[%s406_s1] sm:$0xff]  ;;  %v22_v2 = vld [vmem:[%s406_s1 + $0x8] sm:$0x3]  ;;  %vm276_vm2 = vmpackc.low %vm34_vm0, %vm307_vm1  ;;  %278 = vmatprep.subr.bf16.mxu1 %v306_v0  ;;  %v309_v4 = vmov 0.0   ;;  %vm30_vm4 = vcmask 80896   ;;  %vm202_vm5 = vcmask 15360  }
   0x2   :  { %v275_v3 = vpack.c.bf16 %v22_v2, %v21_v1  ;;  %236 = vmatprep.mubr.msk.f32.mxu0 %vm308_vm3, %v309_v4  ;;  %v109_v5 = vld [vmem:[%s407_s3] sm:$0xff]  ;;  %v110_v6 = vld [vmem:[%s407_s3 + $0x8] sm:$0xff]  ;;  %271 = vmatprep.mubr.msk.f32.mxu1 %vm308_vm3, %v309_v4  ;;  %v111_v8 = vld [vmem:[%s407_s3 + $0x10] sm:$0xff] }
   0x3   :  { %v279_v7 = vpack.c.bf16 %v110_v6, %v109_v5  ;;  %v112_v9 = vld [vmem:[%s407_s3 + $0x18] sm:$0xff]  ;;  %v20_v10 = vld [vmem:[%s408_s0] sm:$0xff]  ;;  %v114_v13 = vld [vmem:[%s407_s3 + $0x28] sm:$0xff] }
   0x4   :  { %277 = vmatpush3.bf16.msk.msra.mxu0 %vm276_vm2, %v275_v3  ;;  %v282_v11 = vpack.c.bf16 %v112_v9, %v111_v8  ;;  %v113_v12 = vld [vmem:[%s407_s3 + $0x20] sm:$0xff]  ;;  %v115_v15 = vld [vmem:[%s407_s3 + $0x30] sm:$0xff]  ;;  %v116_v16 = vld [vmem:[%s407_s3 + $0x38] sm:$0xff] }
   0x5   :  { %280 = vmatpush3.bf16.msra.mxu1 %v279_v7  ;;  %v285_v14 = vpack.c.bf16 %v114_v13, %v113_v12  ;;  %v288_v17 = vpack.c.bf16 %v116_v16, %v115_v15  ;;  %v117_v18 = vld [vmem:[%s407_s3 + $0x40] sm:$0xff]  ;;  %v118_v19 = vld [vmem:[%s407_s3 + $0x48] sm:$0xff]  ;;  %v119_v21 = vld [vmem:[%s407_s3 + $0x50] sm:$0xff] }
   0x6   :  { %281 = vmatprep.subr.bf16.mxu1 %v306_v0  ;;  %v291_v20 = vpack.c.bf16 %v118_v19, %v117_v18  ;;  %v120_v22 = vld [vmem:[%s407_s3 + $0x58] sm:$0xff]  ;;  %v121_v24 = vld [vmem:[%s407_s3 + $0x60] sm:$0xff]  ;;  %v122_v25 = vld [vmem:[%s407_s3 + $0x68] sm:$0xff] }
   0x7   :  { %237 = vmatmul.mubr.msk.f32.vlgmr.msra.gmra.mrb[0].mxu0 %vm30_vm4, %v20_v10  ;;  %v294_v23 = vpack.c.bf16 %v120_v22, %v119_v21  ;;  %v297_v26 = vpack.c.bf16 %v122_v25, %v121_v24  ;;  %v123_v27 = vld [vmem:[%s407_s3 + $0x70] sm:$0xff]  ;;  %v124_v28 = vld [vmem:[%s407_s3 + $0x78] sm:$0xff]  ;;  %v208_v30 = vld [vmem:[%s409_s2] ss:$0 sm:$0xff] }
   0x8   :  { %v300_v29 = vpack.c.bf16 %v124_v28, %v123_v27  ;;  %v211_v35 = vld [vmem:[%s410_s4] ss:$0 sm:$0xff] }
   0x9   :  { %283 = vmatpush3.bf16.msra.mxu1 %v282_v11 }
   0xa   :  { %284 = vmatprep.subr.bf16.mxu1 %v306_v0 }
   0xd   :  { %286 = vmatpush3.bf16.msra.mxu1 %v285_v14 }
   0xe   :  { %287 = vmatprep.subr.bf16.mxu1 %v306_v0 }
  0x11   :  { %289 = vmatpush3.bf16.msra.mxu1 %v288_v17 }
  0x12   :  { %290 = vmatprep.subr.bf16.mxu1 %v306_v0 }
  0x15   :  { %292 = vmatpush3.bf16.msra.mxu1 %v291_v20 }
  0x16   :  { %293 = vmatprep.subr.bf16.mxu1 %v306_v0 }
  0x19   :  { %295 = vmatpush3.bf16.msra.mxu1 %v294_v23 }
  0x1a   :  { %296 = vmatprep.subr.bf16.mxu1 %v306_v0 }
  0x1d   :  { %298 = vmatpush3.bf16.msra.mxu1 %v297_v26 }
  0x1e   :  { %299 = vmatprep.subr.bf16.mxu1 %v306_v0 }
  0x21   :  { %301 = vmatpush3.bf16.msra.mxu1 %v300_v29 }
  0xda   :  { %v104_v31 = vpop.f32.mrb[0].mxu0 }
  0xdb   :  { %v105_v32 = vadd.f32 %v208_v30, %v104_v31  ;;  %v238_v33 = vpop.f32.mrb[1].mxu0 }
  0xdd   :  { %v108_v34 = vmax.f32 %v105_v32, 0.0 }
  0xdf   :  { %272 = vmatmul.mubr.f32.vlgmr.msra.gmra.mrb[0].mxu1 %v108_v34 }
 0x1b2   :  { %v198_v36 = vpop.f32.mrb[0].mxu1 }
 0x1b3   :  { %v199_v37 = vadd.f32 %v211_v35, %v198_v36  ;;  %v273_v38 = vpop.f32.mrb[1].mxu1 }
 0x1b5   :  { %203 = vst.msk [vmem:[%s411_s5] sm:$0xff] %vm202_vm5, %v199_v37 }

</bundles_post_ra>
